<compile_context>
chip_gen: v6e
topology: v6e:2x2x1
jax: 0.10.0
libtpu: 0.0.40
codegen_flags: <defaults>
</compile_context>

<pallas_src>
import functools

import jax
import jax.numpy as jnp
from jax.experimental import pallas as pl
from jax.experimental.pallas import tpu as pltpu


def _round_up(x, m):
    return (x + m - 1) // m * m


# ----------------------------------------------------------------------------
# Fused kernel: im2col conv (all kernel sizes) -> mask -> max-pool -> bias/ReLU
#               -> fc1 -> ReLU -> fc2
# ----------------------------------------------------------------------------
def _fused_kernel(x_ref, mask_ref, wc_ref, bc_ref, w1_ref, b1_ref,
                  w2_ref, b2_ref, o_ref, *, T, kmax):
    x = x_ref[...]                                            # (Bt, S_pad, E) bf16

    # im2col: concatenate the kmax shifted slices along the lane (E) axis.
    xc = jnp.concatenate([x[:, j:j + T, :] for j in range(kmax)], axis=-1)

    # One MXU pass for every kernel size: (Bt, T, kmax*E) x (kmax*E, N_pad).
    s = jnp.einsum("btk,kn->btn", xc, wc_ref[...],
                   preferred_element_type=jnp.float32)        # (Bt, T, N_pad) f32

    # Mask partial-window positions of the smaller kernel sizes, then max-pool.
    s = s + mask_ref[...][None, :, :]
    feat = jnp.max(s, axis=1)                                 # (Bt, N_pad)

    # Bias + ReLU deferred past the max (exact for constant bias + monotone ReLU).
    feat = jnp.maximum(feat + bc_ref[...], 0.0)

    # TODO(synk): nn.Dropout is identity at inference; training-mode Bernoulli
    # masking not implemented.
    h = jnp.dot(feat.astype(jnp.bfloat16), w1_ref[...],
                preferred_element_type=jnp.float32) + b1_ref[...]
    h = jnp.maximum(h, 0.0)
    o_ref[...] = jnp.dot(h.astype(jnp.bfloat16), w2_ref[...],
                         preferred_element_type=jnp.float32) + b2_ref[...]


def _fused_forward(x, mask, packed, *, B_tile, T, kmax):
    B_padded, S_pad, E = x.shape
    N_pad = packed["wc"].shape[1]
    H_pad = packed["w1"].shape[1]
    K_pad = packed["w2"].shape[1]

    rep2 = lambda i: (0, 0)   # weights / mask / biases: same block every step

    return pl.pallas_call(
        functools.partial(_fused_kernel, T=T, kmax=kmax),
        out_shape=jax.ShapeDtypeStruct((B_padded, K_pad), jnp.float32),
        grid_spec=pltpu.PrefetchScalarGridSpec(
            num_scalar_prefetch=0,
            grid=(B_padded // B_tile,),
            in_specs=[
                pl.BlockSpec((B_tile, S_pad, E), lambda i: (i, 0, 0)),
                pl.BlockSpec((T, N_pad), rep2),
                pl.BlockSpec((kmax * E, N_pad), rep2),
                pl.BlockSpec((1, N_pad), rep2),
                pl.BlockSpec((N_pad, H_pad), rep2),
                pl.BlockSpec((1, H_pad), rep2),
                pl.BlockSpec((H_pad, K_pad), rep2),
                pl.BlockSpec((1, K_pad), rep2),
            ],
            out_specs=pl.BlockSpec((B_tile, K_pad), lambda i: (i, 0)),
        ),
        compiler_params=pltpu.CompilerParams(
            dimension_semantics=("parallel",),       # shard batch across cores
            vmem_limit_bytes=32 * 1024 * 1024,       # safe on v5e/v6e/v7x
        ),
    )(x, mask, packed["wc"], packed["bc"], packed["w1"], packed["b1"],
      packed["w2"], packed["b2"])


# ----------------------------------------------------------------------------
# Host-side weight packing (done once):
#   * all conv weights packed into one (kmax*E, N_pad) matrix (zero taps for
#     smaller kernel sizes, zero padding channels),
#   * fc1/fc2 zero-padded to lane-dense 128-multiples.
# ----------------------------------------------------------------------------
def pack_params(params):
    convs = params["convs"]
    kernel_sizes = [int(w.shape[0]) for (w, _) in convs]
    E = int(convs[0][0].shape[1])
    C = int(convs[0][0].shape[2])
    kmax = max(kernel_sizes)
    F = len(convs) * C
    N_pad = _round_up(F, 128)
    H = int(params["fc1_w"].shape[1])
    H_pad = _round_up(H, 128)
    K = int(params["fc2_w"].shape[1])
    K_pad = _round_up(K, 128)

    wc = jnp.zeros((kmax * E, N_pad), jnp.float32)
    bc = jnp.zeros((1, N_pad), jnp.float32)
    for i, (w, b) in enumerate(convs):
        k = kernel_sizes[i]
        for j in range(k):
            wc = wc.at[j * E:(j + 1) * E, i * C:(i + 1) * C].set(w[j])
        bc = bc.at[:, i * C:(i + 1) * C].set(b)

    w1 = jnp.zeros((N_pad, H_pad), jnp.float32).at[:F, :H].set(params["fc1_w"])
    b1 = jnp.zeros((1, H_pad), jnp.float32).at[:, :H].set(params["fc1_b"])
    w2 = jnp.zeros((H_pad, K_pad), jnp.float32).at[:H, :K].set(params["fc2_w"])
    b2 = jnp.zeros((1, K_pad), jnp.float32).at[:, :K].set(params["fc2_b"])

    return {
        "embedding": params["embedding"].astype(jnp.bfloat16),  # bf16 HBM stream
        "wc": wc.astype(jnp.bfloat16), "bc": bc,
        "w1": w1.astype(jnp.bfloat16), "b1": b1,
        "w2": w2.astype(jnp.bfloat16), "b2": b2,
    }


# ----------------------------------------------------------------------------
# Full forward pass.
# ----------------------------------------------------------------------------
@functools.partial(jax.jit,
                   static_argnames=("kernel_sizes", "output_channels",
                                    "class_num", "b_tile_cap"))
def news_model_forward(tokens, packed, *, kernel_sizes, output_channels,
                       class_num, b_tile_cap=128):
    B, S = tokens.shape
    E = packed["embedding"].shape[1]
    N_pad = packed["wc"].shape[1]
    C = output_channels
    kmax, kmin = max(kernel_sizes), min(kernel_sizes)
    T = S - kmin + 1                  # longest valid-conv output length
    assert S >= kmax, "sequence shorter than largest kernel size"

    # Embedding gather (glue).
    # TODO(synk): fuse the gather into the Pallas kernel via
    # PrefetchScalarGridSpec + pl.Element row-gather to drop the (B,S,E)
    # HBM round-trip entirely.
    x = jnp.take(packed["embedding"], tokens, axis=0)           # (B, S, E) bf16
    x = jnp.pad(x, ((0, 0), (0, kmax - kmin), (0, 0)))          # (B, S_pad, E)

    # Additive mask: -1e30 on time positions that are not valid conv outputs
    # for a given kernel-size channel group (constant-folded at trace time).
    mask = jnp.zeros((T, N_pad), jnp.float32)
    for i, k in enumerate(kernel_sizes):
        if k > kmin:
            mask = mask.at[S - k + 1:, i * C:(i + 1) * C].set(-1e30)

    # Batch tiling: single block for small B, multiple-of-8 tiles otherwise.
    # (Shrink b_tile_cap if B_tile*S_pad*E*2B * 2 buffers approaches the
    #  scoped-VMEM budget — particularly on v7x with 64 MiB physical VMEM.)
    B_tile = B if B <= b_tile_cap else b_tile_cap
    B_padded = _round_up(B, B_tile)
    if B_padded != B:
        x = jnp.pad(x, ((0, B_padded - B), (0, 0), (0, 0)))

    out = _fused_forward(x, mask, packed, B_tile=B_tile, T=T, kmax=kmax)
    return out[:B, :class_num]


# ----------------------------------------------------------------------------
# Pure-JAX reference (mirrors the kernel's bf16-operand / f32-accum math).
# ----------------------------------------------------------------------------
def reference_forward(tokens, params):
    x = jnp.take(params["embedding"], tokens, axis=0).astype(jnp.bfloat16)
    pooled = []
    for (w, b) in params["convs"]:
        k = w.shape[0]
        T = x.shape[1] - k + 1
        s = sum(jnp.einsum("bte,ec->btc", x[:, j:j + T, :],
                           w[j].astype(jnp.bfloat16),
                           preferred_element_type=jnp.float32)
                for j in range(k))
        pooled.append(jnp.maximum(jnp.max(s, axis=1) + b, 0.0))
    feat = jnp.concatenate(pooled, axis=1)
    h = jnp.maximum(
        jnp.dot(feat.astype(jnp.bfloat16), params["fc1_w"].astype(jnp.bfloat16),
                preferred_element_type=jnp.float32) + params["fc1_b"], 0.0)
    return jnp.dot(h.astype(jnp.bfloat16), params["fc2_w"].astype(jnp.bfloat16),
                   preferred_element_type=jnp.float32) + params["fc2_b"]


# ----------------------------------------------------------------------------
# Deterministic parameter construction (matches the module's __init__ shapes).
# ----------------------------------------------------------------------------
def init_params(key, *, vocab_size, vector_size, output_channels,
                kernel_sizes, linear_one, class_num):
    keys = jax.random.split(key, 4 + 2 * len(kernel_sizes))
    emb = 0.02 * jax.random.normal(keys[0], (vocab_size, vector_size),
                                   jnp.float32)
    emb = emb.at[0].set(0.0)                      # padding_idx = 0

    convs = []
    for i, k in enumerate(kernel_sizes):
        # torch Conv1d weight is (C_out, E, k); stored here as (k, E, C_out).
        w = 0.1 * jax.random.normal(keys[1 + 2 * i],
                                    (k, vector_size, output_channels),
                                    jnp.float32)
        b = 0.1 * jax.random.normal(keys[2 + 2 * i], (1, output_channels),
                                    jnp.float32)
        convs.append((w, b))

    F_in = len(kernel_sizes) * output_channels
    fc1_w = 0.1 * jax.random.normal(keys[-3], (F_in, linear_one), jnp.float32)
    fc1_b = 0.1 * jax.random.normal(keys[-2], (1, linear_one), jnp.float32)
    fc2_w = 0.1 * jax.random.normal(keys[-1], (linear_one, class_num),
                                    jnp.float32)
    fc2_b = jnp.zeros((1, class_num), jnp.float32)

    return {"embedding": emb, "convs": convs,
            "fc1_w": fc1_w, "fc1_b": fc1_b,
            "fc2_w": fc2_w, "fc2_b": fc2_b}


if __name__ == "__main__":
    B, S = 2, 16
    cfg = dict(vocab_size=50, vector_size=32, output_channels=16,
               kernel_sizes=(2, 3, 4), linear_one=32, class_num=4)

    key = jax.random.PRNGKey(0)
    k_tok, k_par = jax.random.split(key)
    params = init_params(k_par, **cfg)
    tokens = jax.random.randint(k_tok, (B, S), 0, cfg["vocab_size"],
                                dtype=jnp.int32)

    packed = pack_params(params)
    out = news_model_forward(tokens, packed,
                             kernel_sizes=cfg["kernel_sizes"],
                             output_channels=cfg["output_channels"],
                             class_num=cfg["class_num"])
    out = jax.block_until_ready(out)

    ref = reference_forward(tokens, params)
    assert out.shape == (B, cfg["class_num"])
    max_diff = float(jnp.max(jnp.abs(out - ref)))
    assert jnp.allclose(out, ref, atol=2e-2, rtol=2e-2), (
        "mismatch vs reference, max abs diff %.4e" % max_diff)

    print("KERNEL_OK")
</pallas_src>

<mosaic_0001>
module attributes {stable_mosaic.version = 11 : i64} {
  func.func @_fused_kernel(%arg0: i32, %arg1: memref<2x18x32xbf16, #tpu.memory_space<vmem>>, %arg2: memref<15x128xf32, #tpu.memory_space<vmem>>, %arg3: memref<128x128xbf16, #tpu.memory_space<vmem>>, %arg4: memref<1x128xf32, #tpu.memory_space<vmem>>, %arg5: memref<128x128xbf16, #tpu.memory_space<vmem>>, %arg6: memref<1x128xf32, #tpu.memory_space<vmem>>, %arg7: memref<128x128xbf16, #tpu.memory_space<vmem>>, %arg8: memref<1x128xf32, #tpu.memory_space<vmem>>, %arg9: memref<2x128xf32, #tpu.memory_space<vmem>>) attributes {dimension_semantics = [#tpu.dimension_semantics<parallel>], iteration_bounds = array<i64: 1>, scalar_prefetch = 0 : i64, scratch_operands = 0 : i64, tpu.core_type = #tpu.core_type<tc>, window_params = [{transform_indices = @transform_0, window_bounds = array<i64: 2, 18, 32>}, {pipeline_mode = #tpu.pipeline_mode<synchronous>, transform_indices = @transform_1, window_bounds = array<i64: 15, 128>}, {pipeline_mode = #tpu.pipeline_mode<synchronous>, transform_indices = @transform_2, window_bounds = array<i64: 128, 128>}, {pipeline_mode = #tpu.pipeline_mode<synchronous>, transform_indices = @transform_3, window_bounds = array<i64: 1, 128>}, {pipeline_mode = #tpu.pipeline_mode<synchronous>, transform_indices = @transform_4, window_bounds = array<i64: 128, 128>}, {pipeline_mode = #tpu.pipeline_mode<synchronous>, transform_indices = @transform_5, window_bounds = array<i64: 1, 128>}, {pipeline_mode = #tpu.pipeline_mode<synchronous>, transform_indices = @transform_6, window_bounds = array<i64: 128, 128>}, {pipeline_mode = #tpu.pipeline_mode<synchronous>, transform_indices = @transform_7, window_bounds = array<i64: 1, 128>}, {transform_indices = @transform_8, window_bounds = array<i64: 2, 128>}]} {
    %c0 = arith.constant 0 : index
    %c0_0 = arith.constant 0 : index
    %c0_1 = arith.constant 0 : index
    %0 = vector.load %arg1[%c0, %c0_0, %c0_1] : memref<2x18x32xbf16, #tpu.memory_space<vmem>>, vector<2x18x32xbf16>
    %1 = vector.extract_strided_slice %0 {offsets = [0, 0, 0], sizes = [2, 15, 32], strides = [1, 1, 1]} : vector<2x18x32xbf16> to vector<2x15x32xbf16>
    %2 = vector.extract_strided_slice %0 {offsets = [0, 1, 0], sizes = [2, 15, 32], strides = [1, 1, 1]} : vector<2x18x32xbf16> to vector<2x15x32xbf16>
    %3 = vector.extract_strided_slice %0 {offsets = [0, 2, 0], sizes = [2, 15, 32], strides = [1, 1, 1]} : vector<2x18x32xbf16> to vector<2x15x32xbf16>
    %4 = vector.extract_strided_slice %0 {offsets = [0, 3, 0], sizes = [2, 15, 32], strides = [1, 1, 1]} : vector<2x18x32xbf16> to vector<2x15x32xbf16>
    %5 = tpu.concatenate %1, %2, %3, %4 in 2 : vector<2x15x32xbf16>, vector<2x15x32xbf16>, vector<2x15x32xbf16>, vector<2x15x32xbf16> -> vector<2x15x128xbf16>
    %c0_2 = arith.constant 0 : index
    %c0_3 = arith.constant 0 : index
    %6 = vector.load %arg3[%c0_2, %c0_3] : memref<128x128xbf16, #tpu.memory_space<vmem>>, vector<128x128xbf16>
    "tpu.trace_start"() <{level = 10 : i32, message = "btk,kn->btn"}> : () -> ()
    %cst = arith.constant dense<0.000000e+00> : vector<2x15x128xf32>
    %7 = tpu.matmul %5, %6, %cst {dimension_numbers = #tpu.dot_dimension_numbers<[2], [0], [0, 1], [1], [0, 0, 0, 1, 1, 1], [], []>} : vector<2x15x128xbf16>, vector<128x128xbf16>, vector<2x15x128xf32> -> vector<2x15x128xf32>
    "tpu.trace_stop"() : () -> ()
    %c0_4 = arith.constant 0 : index
    %c0_5 = arith.constant 0 : index
    %8 = vector.load %arg2[%c0_4, %c0_5] : memref<15x128xf32, #tpu.memory_space<vmem>>, vector<15x128xf32>
    %9 = vector.shape_cast %8 : vector<15x128xf32> to vector<1x15x128xf32>
    %10 = vector.broadcast %9 : vector<1x15x128xf32> to vector<2x15x128xf32>
    %11 = arith.addf %7, %10 : vector<2x15x128xf32>
    %cst_6 = arith.constant dense<0xFF800000> : vector<2x128xf32>
    %12 = vector.multi_reduction <maximumf>, %11, %cst_6 [1] : vector<2x15x128xf32> to vector<2x128xf32>
    %c0_7 = arith.constant 0 : index
    %c0_8 = arith.constant 0 : index
    %13 = vector.load %arg4[%c0_7, %c0_8] : memref<1x128xf32, #tpu.memory_space<vmem>>, vector<1x128xf32>
    %14 = vector.broadcast %13 : vector<1x128xf32> to vector<2x128xf32>
    %15 = arith.addf %12, %14 : vector<2x128xf32>
    %cst_9 = arith.constant 0.000000e+00 : f32
    %16 = vector.broadcast %cst_9 : f32 to vector<2x128xf32>
    %17 = arith.maximumf %15, %16 : vector<2x128xf32>
    %18 = arith.truncf %17 : vector<2x128xf32> to vector<2x128xbf16>
    %c0_10 = arith.constant 0 : index
    %c0_11 = arith.constant 0 : index
    %19 = vector.load %arg5[%c0_10, %c0_11] : memref<128x128xbf16, #tpu.memory_space<vmem>>, vector<128x128xbf16>
    %cst_12 = arith.constant dense<0.000000e+00> : vector<2x128xf32>
    %20 = tpu.matmul %18, %19, %cst_12 {dimension_numbers = #tpu.dot_dimension_numbers<[1], [0], [0], [1], [0, 0, 1, 1], [], []>} : vector<2x128xbf16>, vector<128x128xbf16>, vector<2x128xf32> -> vector<2x128xf32>
    %c0_13 = arith.constant 0 : index
    %c0_14 = arith.constant 0 : index
    %21 = vector.load %arg6[%c0_13, %c0_14] : memref<1x128xf32, #tpu.memory_space<vmem>>, vector<1x128xf32>
    %22 = vector.broadcast %21 : vector<1x128xf32> to vector<2x128xf32>
    %23 = arith.addf %20, %22 : vector<2x128xf32>
    %cst_15 = arith.constant 0.000000e+00 : f32
    %24 = vector.broadcast %cst_15 : f32 to vector<2x128xf32>
    %25 = arith.maximumf %23, %24 : vector<2x128xf32>
    %26 = arith.truncf %25 : vector<2x128xf32> to vector<2x128xbf16>
    %c0_16 = arith.constant 0 : index
    %c0_17 = arith.constant 0 : index
    %27 = vector.load %arg7[%c0_16, %c0_17] : memref<128x128xbf16, #tpu.memory_space<vmem>>, vector<128x128xbf16>
    %cst_18 = arith.constant dense<0.000000e+00> : vector<2x128xf32>
    %28 = tpu.matmul %26, %27, %cst_18 {dimension_numbers = #tpu.dot_dimension_numbers<[1], [0], [0], [1], [0, 0, 1, 1], [], []>} : vector<2x128xbf16>, vector<128x128xbf16>, vector<2x128xf32> -> vector<2x128xf32>
    %c0_19 = arith.constant 0 : index
    %c0_20 = arith.constant 0 : index
    %29 = vector.load %arg8[%c0_19, %c0_20] : memref<1x128xf32, #tpu.memory_space<vmem>>, vector<1x128xf32>
    %30 = vector.broadcast %29 : vector<1x128xf32> to vector<2x128xf32>
    %31 = arith.addf %28, %30 : vector<2x128xf32>
    %c0_21 = arith.constant 0 : index
    %c0_22 = arith.constant 0 : index
    %32 = vector.load %arg9[%c0_21, %c0_22] : memref<2x128xf32, #tpu.memory_space<vmem>>, vector<2x128xf32>
    tpu.vector_store %arg9[%c0_21, %c0_22], %31 {strides = array<i32>} : memref<2x128xf32, #tpu.memory_space<vmem>>, vector<2x128xf32>,
    return
  }
  func.func @transform_0(%arg0: i32) -> (i32, i32, i32) {
    %c0_i32 = arith.constant 0 : i32
    %c0_i32_0 = arith.constant 0 : i32
    %c0_i32_1 = arith.constant 0 : i32
    return %arg0, %c0_i32, %c0_i32_0 : i32, i32, i32
  }
  func.func @transform_1(%arg0: i32) -> (i32, i32) {
    %c0_i32 = arith.constant 0 : i32
    %c0_i32_0 = arith.constant 0 : i32
    %c0_i32_1 = arith.constant 0 : i32
    return %c0_i32, %c0_i32_0 : i32, i32
  }
  func.func @transform_2(%arg0: i32) -> (i32, i32) {
    %c0_i32 = arith.constant 0 : i32
    %c0_i32_0 = arith.constant 0 : i32
    %c0_i32_1 = arith.constant 0 : i32
    return %c0_i32, %c0_i32_0 : i32, i32
  }
  func.func @transform_3(%arg0: i32) -> (i32, i32) {
    %c0_i32 = arith.constant 0 : i32
    %c0_i32_0 = arith.constant 0 : i32
    %c0_i32_1 = arith.constant 0 : i32
    return %c0_i32, %c0_i32_0 : i32, i32
  }
  func.func @transform_4(%arg0: i32) -> (i32, i32) {
    %c0_i32 = arith.constant 0 : i32
    %c0_i32_0 = arith.constant 0 : i32
    %c0_i32_1 = arith.constant 0 : i32
    return %c0_i32, %c0_i32_0 : i32, i32
  }
  func.func @transform_5(%arg0: i32) -> (i32, i32) {
    %c0_i32 = arith.constant 0 : i32
    %c0_i32_0 = arith.constant 0 : i32
    %c0_i32_1 = arith.constant 0 : i32
    return %c0_i32, %c0_i32_0 : i32, i32
  }
  func.func @transform_6(%arg0: i32) -> (i32, i32) {
    %c0_i32 = arith.constant 0 : i32
    %c0_i32_0 = arith.constant 0 : i32
    %c0_i32_1 = arith.constant 0 : i32
    return %c0_i32, %c0_i32_0 : i32, i32
  }
  func.func @transform_7(%arg0: i32) -> (i32, i32) {
    %c0_i32 = arith.constant 0 : i32
    %c0_i32_0 = arith.constant 0 : i32
    %c0_i32_1 = arith.constant 0 : i32
    return %c0_i32, %c0_i32_0 : i32, i32
  }
  func.func @transform_8(%arg0: i32) -> (i32, i32) {
    %c0_i32 = arith.constant 0 : i32
    %c0_i32_0 = arith.constant 0 : i32
    return %arg0, %c0_i32 : i32, i32
  }
}

</mosaic_0001>

<bundles_post_ra>
// kernel: news_model_forward.1
= control target key start
LH: loop header
LB: loop body
LE: loop exit
PB: predicated region body
PF: predicated region fallthrough
CT: control target
= control target key end

     0   :  { %vm71_vm0 = vcmask 1046528   ;;  %s1642_s13 = smov 64   ;;  %s1643_s17 = smov 32   ;;  %vm82_vm1 = vsmask.f32 6400  ;;  %s1951_s0 = inlined_call_operand.vmem [shape: bf16[2,18,32], index: 0, kind: input, shape index: {}]   ;;  %s1952_s1 = inlined_call_operand.vmem [shape: f32[15,128], index: 1, kind: input, shape index: {}]   ;;  %s1953_s2 = inlined_call_operand.vmem [shape: bf16[128,128], index: 2, kind: input, shape index: {}]   ;;  %s1954_s3 = inlined_call_operand.vmem [shape: f32[1,128], index: 3, kind: input, shape index: {}]   ;;  %s1955_s4 = inlined_call_operand.vmem [shape: bf16[128,128], index: 4, kind: input, shape index: {}]   ;;  %s1956_s5 = inlined_call_operand.vmem [shape: f32[1,128], index: 5, kind: input, shape index: {}]   ;;  %s1957_s6 = inlined_call_operand.vmem [shape: bf16[128,128], index: 6, kind: input, shape index: {}]   ;;  %s1958_s7 = inlined_call_operand.vmem [shape: f32[1,128], index: 7, kind: input, shape index: {}]   ;;  %s1959_s8 = inlined_call_operand.hbm [shape: f32[2,128], index: 8, kind: output, shape index: {}]  }
   0x1   :  { %v1697_v0 = vld [vmem:[%s1951_s0] sm:$0xff]   ;;  %v1591_v1 = vld [vmem:[%s1951_s0 + $0x8] ss:$0 sps:$4 sm:$0x11]   ;;  %v1705_v2 = vld [vmem:[%s1951_s0 + $0xc] sm:$0xff]   ;;  %s1644_s20 = smov 96  }
   0x2   :  { %v72_v3 = vrot.slane %v1697_v0, 1  ;;  %v73_v4 = vrot.slane %v1591_v1, 1  ;;  %v48_v5 = vshrl.u32 %v1697_v0, 16  ;;  %v50_v6 = vshll.u32 %v1697_v0, 16  ;;  %v1594_v18 = vld [vmem:[%s1953_s2 + $0x38] sm:$0xff]   ;;  %v1595_v23 = vld [vmem:[%s1953_s2 + $0x30] sm:$0xff]  }
   0x3   :  { %v1593_v7 = vld [vmem:[%s1951_s0 + $0x14] ss:$0 sps:$4 sm:$0x11]   ;;  %v75_v8 = vrot.slane %v1705_v2, 1  ;;  %v55_v9 = vshrl.u32 %v1705_v2, 16  ;;  %v57_v10 = vshll.u32 %v1705_v2, 16  ;;  %1523 = vmatprep.subr.bf16.mxu0 %v1594_v18 }
   0x4   :  { %v74_v11 = vsel %vm71_vm0, %v72_v3, %v73_v4  ;;  %v52_v12 = vrot.slane %v50_v6, 1  ;;  %v83_v13 = vrot.slane %v48_v5, 1  ;;  %v84_v14 = vrot.slane %v50_v6, 2  ;;  %1524 = vmatpush3.bf16.msra.mxu0 %v1594_v18  ;;  %v1596_v32 = vld [vmem:[%s1953_s2 + $0x28] sm:$0xff]   ;;  %v1597_v38 = vld [vmem:[%s1953_s2 + $0x20] sm:$0xff]   ;;  %v1598_v40 = vld [vmem:[%s1953_s2 + $0x18] sm:$0xff]  }
   0x5   :  { %78 = vrot.lane.b32.xlu1 %v74_v11, %s1642_s13  ;;  %v76_v15 = vrot.slane %v1593_v7, 1  ;;  %v59_v16 = vrot.slane %v57_v10, 1  ;;  %v95_v17 = vrot.slane %v55_v9, 1  ;;  %v96_v20 = vrot.slane %v57_v10, 2  ;;  %1525 = vmatprep.subr.bf16.mxu0 %v1595_v23  ;;  %v1599_v41 = vld [vmem:[%s1953_s2 + $0x10] sm:$0xff]   ;;  %v1600_v42 = vld [vmem:[%s1953_s2 + $0x8] sm:$0xff]  }
   0x6   :  { %v53_v19 = vor.u32 %v52_v12, %v48_v5  ;;  %v99_v21 = vshrl.u32 %v1593_v7, 16  ;;  %v102_v22 = vshll.u32 %v1593_v7, 16  ;;  %v87_v26 = vshrl.u32 %v1591_v1, 16 }
   0x7   :  { %v77_v24 = vsel %vm71_vm0, %v75_v8, %v76_v15  ;;  %v60_v25 = vor.u32 %v59_v16, %v55_v9  ;;  %v97_v27 = vor.u32 %v96_v20, %v95_v17  ;;  %v90_v30 = vshll.u32 %v1591_v1, 16 }
   0x8   :  { %61 = vrot.lane.b32.xlu0 %v53_v19, %s1643_s17  ;;  %v101_v28 = vrot.slane %v99_v21, 1  ;;  %v104_v29 = vrot.slane %v102_v22, 2  ;;  %v89_v31 = vrot.slane %v87_v26, 1  ;;  %v85_v34 = vor.u32 %v84_v14, %v83_v13  ;;  %1526 = vmatpush3.bf16.msra.mxu0 %v1595_v23 }
   0x9   :  { %80 = vrot.lane.b32.xlu1 %v77_v24, %s1642_s13  ;;  %v92_v35 = vrot.slane %v90_v30, 2  ;;  %1527 = vmatprep.subr.bf16.mxu0 %v1596_v32 }
   0xa   :  { %v105_v33 = vor.u32 %v104_v29, %v101_v28 }
   0xb   :  { %v93_v37 = vor.u32 %v92_v35, %v89_v31 }
   0xc   :  { %63 = vrot.lane.b32.xlu0 %v60_v25, %s1643_s17  ;;  %v106_v36 = vsel %vm82_vm1, %v97_v27, %v105_v33  ;;  %1528 = vmatpush3.bf16.msra.mxu0 %v1596_v32 }
   0xd   :  { %109 = vrot.lane.b32.xlu1 %v106_v36, %s1644_s20  ;;  %v94_v39 = vsel %vm82_vm1, %v85_v34, %v93_v37  ;;  %1529 = vmatprep.subr.bf16.mxu0 %v1597_v38 }
  0x10   :  { %107 = vrot.lane.b32.xlu0 %v94_v39, %s1644_s20  ;;  %1530 = vmatpush3.bf16.msra.mxu0 %v1597_v38 }
  0x11   :  { %1531 = vmatprep.subr.bf16.mxu0 %v1598_v40 }
  0x14   :  { %1532 = vmatpush3.bf16.msra.mxu0 %v1598_v40 }
  0x15   :  { %1533 = vmatprep.subr.bf16.mxu0 %v1599_v41 }
  0x16   :  { %13 = vsyncpa [#allocation3], 0  ;;  %v1601_v43 = vld [vmem:[%s1953_s2] sm:$0xff]   ;;  %v1645_v44 = vmov 1966171168   ;;  %v150_v46 = vlaneseq  ;;  %vm111_vm2 = vcmask 261120  }
  0x17   :  { %v148_v45 = vunpack.c.l.s4 %v1645_v44  ;;  %vm121_vm3 = vcmask 785408   ;;  %vm116_vm4 = vcmask 523264   ;;  %vm1647_vm5 = vmmov 0   ;;  %s1648_s22 = smov [#allocation2]  }
  0x18   :  { %1534 = vmatpush3.bf16.msra.mxu0 %v1599_v41  ;;  %v151_v50 = vshrl.u32 %v150_v46, 7  ;;  %vm1229_vm6 = vcmask 1041409   ;;  %s1441_s23 = sshll.u32 %s1648_s22, 4  ;;  %s1442_s23 = int_to_ptr.vmem [resolvable:$true] %s1441_s23 }
  0x19   :  { %1535 = vmatprep.subr.bf16.mxu0 %v1600_v42  ;;  %v149_v49 = vunpack.c.0.s8 %v148_v45  ;;  %p1625_p1 = scmp.lt.s32.totalorder %s1442_s23, %s1442_s23 }
  0x1b   :  { %v1742_v53 = vsub.s32 %v149_v49, %v151_v50 }
  0x1c   :  { %1536 = vmatpush3.bf16.msra.mxu0 %v1600_v42 }
  0x1d   :  { %1537 = vmatprep.subr.bf16.mxu0 %v1601_v43 }
  0x20   :  { %1538 = vmatpush3.bf16.msra.mxu0 %v1601_v43 }
  0x77   :  { %v79_v47 = vpop.permute.xlu1 %78 }
  0x7a   :  { %v62_v48 = vpop.permute.xlu0 %61 }
  0x7b   :  { %v81_v51 = vpop.permute.xlu1 %80  ;;  %v113_v54 = vsel %vm111_vm2, %v1697_v0, %v62_v48 }
  0x7c   :  { %v118_v61 = vsel %vm116_vm4, %v113_v54, %v79_v47 }
  0x7e   :  { %v64_v52 = vpop.permute.xlu0 %63 }
  0x7f   :  { %v115_v55 = vsel %vm111_vm2, %v1705_v2, %v64_v52  ;;  %v110_v56 = vpop.permute.xlu1 %109 }
  0x80   :  { %v120_v57 = vsel %vm116_vm4, %v115_v55, %v81_v51 }
  0x81   :  { %v125_v58 = vsel %vm121_vm3, %v120_v57, %v110_v56 }
  0x82   :  { %v195_v59 = vcombine.high %v125_v58, %v125_v58  ;;  %v202_v60 = vrot.slane %v125_v58, %v1742_v53  ;;  %v108_v62 = vpop.permute.xlu0 %107 }
  0x83   :  { %v123_v63 = vsel %vm121_vm3, %v118_v61, %v108_v62 }
  0x84   :  { %v209_v1 = vrot.slane %v195_v59, %v1742_v53  ;;  %v210_v3 = vcombine.high %v202_v60, %v202_v60  ;;  %v218_v4 = vrot.slane %v202_v60, %v1742_v53  ;;  %v146_v5 = vcombine.high %v123_v63, %v123_v63 }
  0x85   :  { %v153_v0 = vrot.slane %v123_v63, %v1742_v53  ;;  %v1604_v63 = vld [vmem:[%s1955_s4 + $0x38] sm:$0xff]  }
  0x86   :  { %v211_v6 = vcombine.high %v209_v1, %v209_v1  ;;  %v225_v2 = vrot.slane %v209_v1, %v1742_v53  ;;  %v232_v7 = vrot.slane %v210_v3, %v1742_v53  ;;  %v240_v8 = vcombine.high %v218_v4, %v218_v4  ;;  %v1605_v3 = vld [vmem:[%s1955_s4 + $0x30] sm:$0xff]  }
  0x87   :  { %v260_v9 = vunpack.i.h.s16 %v218_v4  ;;  %v160_v10 = vrot.slane %v146_v5, %v1742_v53  ;;  %v161_v11 = vcombine.high %v153_v0, %v153_v0  ;;  %v169_v25 = vrot.slane %v153_v0, %v1742_v53  ;;  %v1607_v5 = vld [vmem:[%s1955_s4 + $0x20] sm:$0xff]   ;;  %v1608_v0 = vld [vmem:[%s1955_s4 + $0x18] sm:$0xff]  }
  0x88   :  { %v239_v12 = vrot.slane %v211_v6, %v1742_v53  ;;  %v241_v13 = vcombine.high %v225_v2, %v225_v2  ;;  %v242_v14 = vcombine.high %v232_v7, %v232_v7  ;;  %v262_v15 = vunpack.i.h.s16 %v232_v7  ;;  %v1609_v6 = vld [vmem:[%s1955_s4 + $0x10] sm:$0xff]  }
  0x89   :  { %v264_v16 = vunpack.i.h.s16 %v240_v8  ;;  %v268_v17 = vunpack.i.h.s16 %v225_v2  ;;  %v162_v18 = vcombine.high %v160_v10, %v160_v10  ;;  %v1454_v23 = vpack.i.b16 %v232_v7, %v260_v9  ;;  %v1611_v7 = vld [vmem:[%s1955_s4] sm:$0xff]   ;;  %v1613_v9 = vld [vmem:[%s1957_s6 + $0x30] sm:$0xff]  }
  0x8a   :  { %v243_v19 = vcombine.high %v239_v12, %v239_v12  ;;  %v266_v20 = vunpack.i.h.s16 %v242_v14  ;;  %v270_v21 = vunpack.i.h.s16 %v239_v12  ;;  %v272_v22 = vunpack.i.h.s16 %v241_v13 }
  0x8b   :  { %v1455_v24 = vpack.i.b16 %v240_v8, %v262_v15  ;;  %v176_v26 = vrot.slane %v160_v10, %v1742_v53  ;;  %v183_v29 = vrot.slane %v161_v11, %v1742_v53  ;;  %v190_v30 = vrot.slane %v162_v18, %v1742_v53  ;;  %v1612_v8 = vld [vmem:[%s1957_s6 + $0x38] sm:$0xff]   ;;  %v1614_v10 = vld [vmem:[%s1957_s6 + $0x28] sm:$0xff]   ;;  %v1615_v11 = vld [vmem:[%s1957_s6 + $0x20] sm:$0xff]  }
  0x8c   :  { %v1457_v27 = vpack.i.b16 %v225_v2, %v266_v20  ;;  %v1459_v28 = vpack.i.b16 %v241_v13, %v270_v21  ;;  %v1456_v31 = vpack.i.b16 %v242_v14, %v264_v16  ;;  %v1458_v32 = vpack.i.b16 %v239_v12, %v268_v17  ;;  %v1610_v2 = vld [vmem:[%s1955_s4 + $0x8] sm:$0xff]   ;;  %v1616_v12 = vld [vmem:[%s1957_s6 + $0x18] sm:$0xff]   ;;  %v1617_v13 = vld [vmem:[%s1957_s6 + $0x10] sm:$0xff]  }
  0x8d   :  { %v1460_v33 = vpack.i.b16 %v243_v19, %v272_v22  ;;  %v437_v34 = vcombine.low %v1454_v23, %v1455_v24  ;;  %v194_v35 = vcombine.high %v190_v30, %v190_v30  ;;  %v388_v36 = vcombine.low %v169_v25, %v183_v29  ;;  %v142_v14 = vld [vmem:[%s1952_s1] sm:$0xff]  ;;  %v143_v18 = vld [vmem:[%s1952_s1 + $0x8] sm:$0x7f] }
  0x8e   :  { %v1461_v37 = vcombine.high %v169_v25, %v183_v29  ;;  %v192_v38 = vcombine.high %v176_v26, %v176_v26  ;;  %v438_v39 = vcombine.low %v1456_v31, %v1457_v27  ;;  %v439_v40 = vcombine.low %v1458_v32, %v1459_v28 }
  0x8f   :  { %v1453_v41 = vpack.i.b16 %v218_v4, %v194_v35  ;;  %v390_v42 = vcombine.low %v176_v26, %v190_v30  ;;  %v398_v43 = vrot.slane %v388_v36, %v1742_v53  ;;  %v446_v45 = vrot.slane %v437_v34, %v1742_v53  ;;  %v1606_v4 = vld [vmem:[%s1955_s4 + $0x28] sm:$0xff]  }
  0x90   :  { %v405_v44 = vrot.slane %v1461_v37, %v1742_v53  ;;  %v453_v46 = vrot.slane %v438_v39, %v1742_v53  ;;  %v460_v47 = vrot.slane %v439_v40, %v1742_v53  ;;  %v467_v48 = vrot.slane %v1460_v33, %v1742_v53 }
  0x91   :  { %v391_v49 = vcombine.low %v192_v38, %v1453_v41  ;;  %v412_v52 = vrot.slane %v390_v42, %v1742_v53  ;;  %v1646_v1 = vmov 0.0   ;;  %v276_v15 = vcombine.high %v142_v14, %v142_v14 }
  0x92   :  { %v468_v50 = vcombine.low %v446_v45, %v453_v46  ;;  %v469_v51 = vcombine.low %v460_v47, %v467_v48  ;;  %v420_v55 = vcombine.low %v398_v43, %v405_v44  ;;  %1543 = vmatprep.subr.bf16.mxu1 %v1646_v1  ;;  %1563 = vmatprep.subr.bf16.mxu0 %v1646_v1 }
  0x93   :  { %v419_v54 = vrot.slane %v391_v49, %v1742_v53  ;;  %1544 = vmatpush3.bf16.msra.mxu1 %v1604_v63  ;;  %1559 = vmatprep.mubr.msk.bf16.mxu1 %vm1647_vm5, %v1646_v1  ;;  %v283_v16 = vrot.slane %v142_v14, %v1742_v53  ;;  %v290_v17 = vrot.slane %v276_v15, %v1742_v53 }
  0x94   :  { %v476_v57 = vrot.slane %v468_v50, %v1742_v53  ;;  %v483_v58 = vrot.slane %v469_v51, %v1742_v53  ;;  %v428_v59 = vrot.slane %v420_v55, %v1742_v53  ;;  %1545 = vmatprep.subr.bf16.mxu1 %v1646_v1  ;;  %v332_v21 = vrot.slane %v143_v18, %v1742_v53 }
  0x95   :  { %v421_v56 = vcombine.low %v412_v52, %v419_v54  ;;  %v291_v19 = vcombine.high %v283_v16, %v283_v16  ;;  %v292_v20 = vcombine.high %v290_v17, %v290_v17  ;;  %v1839_v22 = vrot.slane %v283_v16, %v1742_v53 }
  0x96   :  { %v484_v62 = vcombine.low %v476_v57, %v483_v58  ;;  %v306_v23 = vrot.slane %v290_v17, %v1742_v53  ;;  %v325_v26 = vcombine.high %v143_v18, %v143_v18  ;;  %v340_v27 = vcombine.high %v332_v21, %v332_v21 }
  0x97   :  { %v435_v60 = vrot.slane %v421_v56, %v1742_v53  ;;  %1546 = vmatpush3.bf16.msra.mxu1 %v1605_v3  ;;  %v313_v24 = vrot.slane %v291_v19, %v1742_v53  ;;  %v320_v25 = vrot.slane %v292_v20, %v1742_v53  ;;  %v348_v28 = vrot.slane %v332_v21, %v1742_v53 }
  0x98   :  { %1547 = vmatprep.subr.bf16.mxu1 %v1646_v1  ;;  %v321_v29 = vcombine.high %v1839_v22, %v1839_v22  ;;  %v322_v30 = vcombine.high %v306_v23, %v306_v23  ;;  %v339_v33 = vrot.slane %v325_v26, %v1742_v53  ;;  %v362_v34 = vrot.slane %v340_v27, %v1742_v53 }
  0x99   :  { %v436_v61 = vcombine.low %v428_v59, %v435_v60  ;;  %v323_v31 = vcombine.high %v313_v24, %v313_v24  ;;  %v324_v32 = vcombine.high %v320_v25, %v320_v25  ;;  %v370_v41 = vcombine.high %v348_v28, %v348_v28 }
  0x9a   :  { %v633_v35 = vcombine.low %v313_v24, %v321_v29  ;;  %v635_v37 = vcombine.low %v320_v25, %v322_v30  ;;  %v341_v39 = vcombine.high %v339_v33, %v339_v33  ;;  %v355_v40 = vrot.slane %v339_v33, %v1742_v53 }
  0x9b   :  { %1539 = vmatprep.mubr.bf16.mxu0 %v436_v61  ;;  %1548 = vmatpush3.bf16.msra.mxu1 %v1606_v4  ;;  %v634_v36 = vcombine.low %v323_v31, %v306_v23  ;;  %v636_v38 = vcombine.low %v324_v32, %v348_v28  ;;  %v372_v42 = vcombine.high %v362_v34, %v362_v34 }
  0x9c   :  { %1540 = vmatmul.mubr.bf16.vlgmr.msra.gmra.mxu0 %v484_v62  ;;  %1549 = vmatprep.subr.bf16.mxu1 %v1646_v1  ;;  %v535_v43 = vcombine.low %v1839_v22, %v313_v24  ;;  %v1470_v44 = vcombine.high %v1839_v22, %v313_v24  ;;  %v537_v45 = vcombine.low %v306_v23, %v320_v25 }
  0x9d   :  { %1579 = vmatprep.mubr.msk.bf16.mxu0 %vm1647_vm5, %v1646_v1  ;;  %1564 = vmatpush3.bf16.msra.mxu0 %v1612_v8  ;;  %v1471_v46 = vcombine.high %v306_v23, %v320_v25  ;;  %v643_v47 = vrot.slane %v633_v35, %v1742_v53  ;;  %v650_v48 = vrot.slane %v634_v36, %v1742_v53 }
  0x9e   :  { %1565 = vmatprep.subr.bf16.mxu0 %v1646_v1  ;;  %v657_v49 = vrot.slane %v635_v37, %v1742_v53  ;;  %v664_v50 = vrot.slane %v636_v38, %v1742_v53  ;;  %v369_v51 = vrot.slane %v341_v39, %v1742_v53  ;;  %v371_v52 = vcombine.high %v355_v40, %v355_v40 }
  0x9f   :  { %1550 = vmatpush3.bf16.msra.mxu1 %v1607_v5  ;;  %v682_v54 = vcombine.low %v362_v34, %v370_v41  ;;  %v683_v55 = vcombine.low %v372_v42, %v355_v40  ;;  %v545_v56 = vrot.slane %v535_v43, %v1742_v53  ;;  %v552_v57 = vrot.slane %v1470_v44, %v1742_v53 }
  0xa0   :  { %1551 = vmatprep.subr.bf16.mxu1 %v1646_v1  ;;  %v559_v58 = vrot.slane %v537_v45, %v1742_v53  ;;  %v566_v59 = vrot.slane %v1471_v46, %v1742_v53  ;;  %v665_v60 = vcombine.low %v643_v47, %v650_v48  ;;  %v666_v61 = vcombine.low %v657_v49, %v664_v50 }
  0xa1   :  { %1566 = vmatpush3.bf16.msra.mxu0 %v1613_v9  ;;  %v684_v62 = vcombine.low %v369_v51, %v371_v52  ;;  %v691_v63 = vrot.slane %v682_v54, %v1742_v53  ;;  %v698_v3 = vrot.slane %v683_v55, %v1742_v53  ;;  %v567_v4 = vcombine.low %v545_v56, %v552_v57 }
  0xa2   :  { %1567 = vmatprep.subr.bf16.mxu0 %v1646_v1  ;;  %v568_v5 = vcombine.low %v559_v58, %v566_v59  ;;  %v586_v15 = vcombine.low %v355_v40, %v369_v51  ;;  %v587_v16 = vcombine.low %v371_v52, %v1839_v22 }
  0xa3   :  { %1552 = vmatpush3.bf16.msra.mxu1 %v1608_v0  ;;  %v673_v0 = vrot.slane %v665_v60, %v1742_v53  ;;  %v575_v8 = vrot.slane %v567_v4, %v1742_v53 }
  0xa4   :  { %1553 = vmatprep.subr.bf16.mxu1 %v1646_v1  ;;  %v582_v9 = vrot.slane %v568_v5, %v1742_v53  ;;  %v608_v25 = vrot.slane %v586_v15, %v1742_v53  ;;  %v615_v26 = vrot.slane %v587_v16, %v1742_v53 }
  0xa5   :  { %1568 = vmatpush3.bf16.msra.mxu0 %v1614_v10 }
  0xa6   :  { %1569 = vmatprep.subr.bf16.mxu0 %v1646_v1  ;;  %v583_v17 = vcombine.low %v575_v8, %v582_v9 }
  0xa7   :  { %1554 = vmatpush3.bf16.msra.mxu1 %v1609_v6  ;;  %v680_v6 = vrot.slane %v666_v61, %v1742_v53 }
  0xa8   :  { %1555 = vmatprep.subr.bf16.mxu1 %v1646_v1 }
  0xa9   :  { %1570 = vmatpush3.bf16.msra.mxu0 %v1615_v11  ;;  %v681_v10 = vcombine.low %v673_v0, %v680_v6  ;;  %v584_v11 = vcombine.low %v348_v28, %v362_v34 }
  0xaa   :  { %1571 = vmatprep.subr.bf16.mxu0 %v1646_v1 }
  0xab   :  { %1556 = vmatpush3.bf16.msra.mxu1 %v1610_v2  ;;  %v705_v2 = vrot.slane %v684_v62, %v1742_v53  ;;  %v594_v20 = vrot.slane %v584_v11, %v1742_v53 }
  0xac   :  { %1557 = vmatprep.subr.bf16.mxu1 %v1646_v1 }
  0xad   :  { %1572 = vmatpush3.bf16.msra.mxu0 %v1616_v12  ;;  %v1472_v12 = vcombine.high %v348_v28, %v362_v34  ;;  %v720_v14 = vrot.slane %v705_v2, %v1742_v53  ;;  %v617_v34 = vcombine.low %v608_v25, %v615_v26 }
  0xae   :  { %1573 = vmatprep.subr.bf16.mxu0 %v1646_v1 }
  0xaf   :  { %1558 = vmatpush3.bf16.msra.mxu1 %v1611_v7  ;;  %v706_v7 = vcombine.low %v691_v63, %v698_v3  ;;  %v601_v24 = vrot.slane %v1472_v12, %v1742_v53  ;;  %v631_v42 = vrot.slane %v617_v34, %v1742_v53 }
  0xb1   :  { %1574 = vmatpush3.bf16.msra.mxu0 %v1617_v13  ;;  %v713_v13 = vrot.slane %v706_v7, %v1742_v53  ;;  %v616_v33 = vcombine.low %v594_v20, %v601_v24 }
  0xb2   :  { %1575 = vmatprep.subr.bf16.mxu0 %v1646_v1 }
  0xb3   :  { %v721_v23 = vcombine.low %v713_v13, %v720_v14  ;;  %v624_v41 = vrot.slane %v616_v33, %v1742_v53 }
  0xb5   :  { %v632_v52 = vcombine.low %v624_v41, %v631_v42 }
 0x15c   :  { %v1541_v18 = vpop.f32.mrf.mxu0 }
 0x15d   :  { %v769_v19 = vadd.f32 %v1541_v18, %v681_v10 }
 0x15e   :  { %v760_v21 = vpop.f32.mrf.mxu0 }
 0x15f   :  { %v877_v27 = vcombine.high %v769_v19, %v769_v19  ;;  %v884_v28 = vrot.slane %v769_v19, %v1742_v53  ;;  %v761_v29 = vadd.f32 %v760_v21, %v583_v17 }
 0x160   :  { %v1542_v30 = vpop.f32.mrf.mxu0 }
 0x161   :  { %v891_v22 = vrot.slane %v877_v27, %v1742_v53  ;;  %v779_v31 = vcombine.high %v761_v29, %v761_v29  ;;  %v772_v32 = vadd.f32 %v1542_v30, %v721_v23  ;;  %v892_v35 = vcombine.high %v884_v28, %v884_v28 }
 0x162   :  { %v786_v39 = vrot.slane %v761_v29, %v1742_v53  ;;  %v1884_v45 = vrot.slane %v884_v28, %v1742_v53  ;;  %v763_v57 = vpop.f32.mrf.mxu0 }
 0x163   :  { %v893_v36 = vcombine.high %v891_v22, %v891_v22  ;;  %v793_v37 = vrot.slane %v779_v31, %v1742_v53  ;;  %v926_v38 = vcombine.high %v772_v32, %v772_v32  ;;  %v933_v40 = vrot.slane %v772_v32, %v1742_v53 }
 0x164   :  { %v914_v43 = vrot.slane %v892_v35, %v1742_v53  ;;  %v907_v50 = vrot.slane %v891_v22, %v1742_v53  ;;  %v794_v51 = vcombine.high %v786_v39, %v786_v39  ;;  %v922_v58 = vcombine.high %v1884_v45, %v1884_v45 }
 0x165   :  { %v795_v44 = vcombine.high %v793_v37, %v793_v37  ;;  %v921_v46 = vrot.slane %v893_v36, %v1742_v53  ;;  %v940_v47 = vrot.slane %v926_v38, %v1742_v53  ;;  %v941_v48 = vcombine.high %v933_v40, %v933_v40 }
 0x166   :  { %v949_v49 = vrot.slane %v933_v40, %v1742_v53  ;;  %v924_v54 = vcombine.high %v914_v43, %v914_v43  ;;  %v809_v59 = vrot.slane %v793_v37, %v1742_v53  ;;  %v923_v4 = vcombine.high %v907_v50, %v907_v50 }
 0x167   :  { %v823_v55 = vrot.slane %v795_v44, %v1742_v53  ;;  %v963_v56 = vrot.slane %v941_v48, %v1742_v53  ;;  %v925_v60 = vcombine.high %v921_v46, %v921_v46  ;;  %v942_v61 = vcombine.high %v940_v47, %v940_v47 }
 0x168   :  { %v956_v62 = vrot.slane %v940_v47, %v1742_v53  ;;  %v971_v63 = vcombine.high %v949_v49, %v949_v49  ;;  %v816_v5 = vrot.slane %v794_v51, %v1742_v53  ;;  %v764_v0 = vadd.f32 %v763_v57, %v632_v52 }
 0x169   :  { %v972_v3 = vcombine.high %v963_v56, %v963_v56  ;;  %v1072_v6 = vcombine.low %v924_v54, %v907_v50  ;;  %v975_v2 = vcombine.low %v809_v59, %v823_v55  ;;  %v1071_v8 = vcombine.low %v914_v43, %v922_v58 }
 0x16a   :  { %v802_v9 = vrot.slane %v786_v39, %v1742_v53  ;;  %v828_v10 = vcombine.high %v764_v0, %v764_v0  ;;  %v835_v11 = vrot.slane %v764_v0, %v1742_v53  ;;  %v1474_v12 = vcombine.high %v809_v59, %v823_v55 }
 0x16b   :  { %v1121_v7 = vcombine.low %v972_v3, %v956_v62  ;;  %v970_v13 = vrot.slane %v942_v61, %v1742_v53  ;;  %v1119_v14 = vcombine.low %v925_v60, %v949_v49  ;;  %v1120_v15 = vcombine.low %v963_v56, %v971_v63 }
 0x16c   :  { %v1073_v16 = vcombine.low %v921_v46, %v923_v4  ;;  %v973_v17 = vcombine.low %v802_v9, %v816_v5  ;;  %v842_v18 = vrot.slane %v828_v10, %v1742_v53  ;;  %v843_v19 = vcombine.high %v835_v11, %v835_v11 }
 0x16d   :  { %v1094_v20 = vrot.slane %v1072_v6, %v1742_v53  ;;  %v1473_v21 = vcombine.high %v802_v9, %v816_v5  ;;  %v997_v23 = vrot.slane %v975_v2, %v1742_v53  ;;  %v1142_v24 = vrot.slane %v1121_v7, %v1742_v53 }
 0x16e   :  { %v844_v25 = vcombine.high %v842_v18, %v842_v18  ;;  %v851_v26 = vrot.slane %v835_v11, %v1742_v53  ;;  %v858_v27 = vrot.slane %v842_v18, %v1742_v53  ;;  %v865_v28 = vrot.slane %v843_v19, %v1742_v53 }
 0x16f   :  { %v1004_v29 = vrot.slane %v1474_v12, %v1742_v53  ;;  %v1128_v30 = vrot.slane %v1119_v14, %v1742_v53  ;;  %v1135_v22 = vrot.slane %v1120_v15, %v1742_v53  ;;  %v1149_v31 = vrot.slane %v970_v13, %v1742_v53 }
 0x170   :  { %v872_v32 = vrot.slane %v844_v25, %v1742_v53  ;;  %v874_v33 = vcombine.high %v858_v27, %v858_v27  ;;  %v1022_v34 = vcombine.low %v851_v26, %v865_v28  ;;  %v1475_v35 = vcombine.high %v851_v26, %v865_v28 }
 0x171   :  { %v1101_v36 = vrot.slane %v1073_v16, %v1742_v53  ;;  %v983_v37 = vrot.slane %v973_v17, %v1742_v53  ;;  %v990_v38 = vrot.slane %v1473_v21, %v1742_v53  ;;  %v1151_v39 = vcombine.low %v1142_v24, %v1149_v31 }
 0x172   :  { %v876_v40 = vcombine.high %v872_v32, %v872_v32  ;;  %v1024_v41 = vcombine.low %v858_v27, %v872_v32  ;;  %v1031_v42 = vrot.slane %v1022_v34, %v1742_v53  ;;  %v1038_v43 = vrot.slane %v1475_v35, %v1742_v53  ;;  %v1619_v34 = vld [vmem:[%s1957_s6] sm:$0xff]  }
 0x173   :  { %v1006_v44 = vcombine.low %v997_v23, %v1004_v29  ;;  %v1150_v46 = vcombine.low %v1128_v30, %v1135_v22  ;;  %v1052_v48 = vrot.slane %v874_v33, %v1742_v53  ;;  %v1005_v51 = vcombine.low %v983_v37, %v990_v38  ;;  %v1618_v33 = vld [vmem:[%s1957_s6 + $0x8] sm:$0xff]   ;;  %v1477_v35 = vld [vmem:[%s1956_s5] ss:$0 sm:$0xff]  ;;  %s1620_s5 = scalar_lea.vmem %s1442_s23, 32 }
 0x174   :  { %v1045_v47 = vrot.slane %v1024_v41, %v1742_v53  ;;  %v1053_v49 = vcombine.low %v1031_v42, %v1038_v43  ;;  %v1070_v50 = vcombine.low %v876_v40, %v1884_v45  ;;  %v1165_v52 = vrot.slane %v1151_v39, %v1742_v53  ;;  %1576 = vmatpush3.bf16.msra.mxu0 %v1618_v33  ;;  %p1621_p0 = scmp.ne.s32.totalorder %s1442_s23, %s1620_s5  ;;  %p1626_p2 = scmp.lt.s32.totalorder %s1620_s5, %s1620_s5 }
 0x175   :  { %v1087_v54 = vrot.slane %v1071_v8, %v1742_v53  ;;  %v1103_v55 = vcombine.low %v1094_v20, %v1101_v36  ;;  %v1020_v58 = vrot.slane %v1006_v44, %v1742_v53  ;;  %v1158_v59 = vrot.slane %v1150_v46, %v1742_v53  ;;  %1577 = vmatprep.subr.bf16.mxu0 %v1646_v1  ;;  %v1486_v1 = vld [vmem:[%s1958_s7] ss:$0 sm:$0xff] }
 0x176   :  { %v1054_v56 = vcombine.low %v1045_v47, %v1052_v48  ;;  %v1080_v57 = vrot.slane %v1070_v50, %v1742_v53  ;;  %v1061_v60 = vrot.slane %v1053_v49, %v1742_v53  ;;  %v1013_v45 = vrot.slane %v1005_v51, %v1742_v53  ;;  %p1627_p3 = por %p1626_p2, %p1625_p1 }
 0x177   :  { %v1166_v63 = vcombine.low %v1158_v59, %v1165_v52  ;;  %v1117_v3 = vrot.slane %v1103_v55, %v1742_v53 }
 0x178   :  { %v1068_v61 = vrot.slane %v1054_v56, %v1742_v53  ;;  %v1102_v62 = vcombine.low %v1080_v57, %v1087_v54  ;;  %v1021_v0 = vcombine.low %v1013_v45, %v1020_v58  ;;  %1578 = vmatpush3.bf16.msra.mxu0 %v1619_v34  ;;  %p1628_p4 = pnand %p1627_p3, %p1621_p0 }
 0x179   :  { %v1180_v7 = vsel %vm71_vm0, %v1166_v63, -inf }
 0x17a   :  { %v1069_v4 = vcombine.low %v1061_v60, %v1068_v61  ;;  %v1110_v5 = vrot.slane %v1102_v62, %v1742_v53  ;;  %v1476_v53 = vld [vmem:[%s1954_s3] ss:$0 sm:$0xff] }
 0x17c   :  { %v1118_v6 = vcombine.low %v1110_v5, %v1117_v3  ;;  %v1172_v2 = vsel %vm71_vm0, %v1069_v4, -inf }
 0x17d   :  { %v1173_v8 = vmax.f32 %v1021_v0, %v1172_v2 }
 0x17e   :  { %v1181_v9 = vmax.f32 %v1118_v6, %v1180_v7 }
 0x17f   :  { %v1174_v10 = vrot.slane %v1173_v8, 4 }
 0x180   :  { %v1182_v11 = vrot.slane %v1181_v9, 4 }
 0x181   :  { %v1175_v12 = vmax.f32 %v1173_v8, %v1174_v10 }
 0x182   :  { %v1183_v13 = vmax.f32 %v1181_v9, %v1182_v11 }
 0x183   :  { %v1176_v14 = vrot.slane %v1175_v12, 2 }
 0x184   :  { %v1184_v15 = vrot.slane %v1183_v13, 2 }
 0x185   :  { %v1177_v16 = vmax.f32 %v1175_v12, %v1176_v14 }
 0x186   :  { %v1185_v17 = vmax.f32 %v1183_v13, %v1184_v15 }
 0x187   :  { %v1178_v18 = vrot.slane %v1177_v16, 1 }
 0x188   :  { %v1186_v19 = vrot.slane %v1185_v17, 1 }
 0x189   :  { %v1179_v20 = vmax.f32 %v1177_v16, %v1178_v18 }
 0x18a   :  { %v1187_v21 = vmax.f32 %v1185_v17, %v1186_v19 }
 0x18b   :  { %v1195_v23 = vadd.f32 %v1476_v53, %v1179_v20 }
 0x18c   :  { %v1196_v24 = vadd.f32 %v1476_v53, %v1187_v21 }
 0x18d   :  { %v1197_v25 = vmax.f32 %v1195_v23, 0.0 }
 0x18e   :  { %v1198_v26 = vmax.f32 %v1196_v24, 0.0 }
 0x18f   :  { %v1199_v27 = vpack.c.bf16 %v1197_v25, %v1197_v25 }
 0x190   :  { %v1200_v28 = vpack.c.bf16 %v1198_v26, %v1198_v26 }
 0x191   :  { %v1226_v30 = vunpack.c.l.b16 %v1199_v27 }
 0x192   :  { %v1227_v29 = vunpack.c.l.b16 %v1200_v28 }
 0x194   :  { %v1228_v22 = vrot.slane %v1227_v29, 7 }
 0x196   :  { %v1230_v31 = vsel %vm1229_vm6, %v1228_v22, %v1226_v30 }
 0x197   :  { %v1231_v32 = vpack.c.b16 %v1230_v31, %v1230_v31 }
 0x199   :  { %1560 = vmatmul.mubr.bf16.vlgmr.msra.gmra.mxu1 %v1231_v32 }
 0x259   :  { %v1315_v36 = vpop.f32.mrf.mxu1 }
 0x25a   :  { %v1316_v37 = vadd.f32 %v1477_v35, %v1315_v36 }
 0x25b   :  { %v1561_v38 = vpop.f32.mrf.mxu1 }
 0x25c   :  { %v1321_v39 = vmax.f32 %v1316_v37, 0.0 }
 0x25d   :  { %v1318_v40 = vpop.f32.mrf.mxu1 }
 0x25e   :  { %v1322_v41 = vpack.c.bf16 %v1321_v39, %v1321_v39 }
 0x25f   :  { %v1562_v42 = vpop.f32.mrf.mxu1 }
 0x260   :  { %1580 = vmatmul.mubr.bf16.vlgmr.msra.gmra.mxu0 %v1322_v41 }
 0x320   :  { %v1428_v43 = vpop.f32.mrf.mxu0 }
 0x321   :  { %v1429_v44 = vadd.f32 %v1486_v1, %v1428_v43 }
 0x322   :  { %v1581_v46 = vpop.f32.mrf.mxu0 }
 0x323   :  { %1434 = vst [vmem:[#allocation2] sm:$0x3] %v1429_v44 }
 0x324   :  { %v1431_v47 = vpop.f32.mrf.mxu0 }
 0x325   :  { %1631 = shalt.err (!%p1628_p4)
}
 0x326   :  { %1444 = dma.vmem_to_hbm [thread:$0]  %s1442_s23, 32, %s1959_s8, [#allocation3]   ;;  %v1582_v48 = vpop.f32.mrf.mxu0 }
 0x327   :  { %1640 = dma.done.wait [#allocation3], 32  }
 0x328   :  { %1641 = vsyncadd [#allocation3], 4294967264 }
 0x329   :  { %1448 = vsyncpa [#allocation3], 1 }

</bundles_post_ra>
